<compile_context>
chip_gen: v6e
topology: v6e:2x2x1
jax: 0.10.0
libtpu: 0.0.40
codegen_flags: <defaults>
</compile_context>

<pallas_src>
import functools
import math

import jax
import jax.numpy as jnp
from jax import lax
from jax.experimental import pallas as pl
from jax.experimental.pallas import tpu as pltpu


def _cdiv(a, b):
    return -(-a // b)


def _vmem_capacity_bytes():
    try:
        info = pltpu.get_tpu_info()
        return int(getattr(info, "vmem_capacity_bytes", 128 << 20))
    except Exception:
        return 128 << 20


def _expand_norm_kernel(x_ref, w_ref, msum_ref, bcast_ref, g_ref, b_ref,
                        o_ref, *, eps, matmul_dtype):
    # x_ref:     (tbh*W, C)      token tile (same block for all p1-group steps)
    # w_ref:     (C, p2*C)       expand-weight slab for the current p1 group
    # msum_ref:  (p2*C, 128)     per-C-group mean matrix (cols >= p2 are zero)
    # bcast_ref: (128, p2*C)     one-hot broadcast back to the group's lanes
    # g_ref/b_ref: (1, p2*C)     gamma/beta tiled p2 times (f32)
    # o_ref:     (tbh, W, p2*C)  output slab (p1 dim squeezed by BlockSpec)
    tbh, wdim, p2c = o_ref.shape

    xs = x_ref[...].astype(matmul_dtype)
    wj = w_ref[...].astype(matmul_dtype)
    # Expand matmul, f32 accumulation on the MXU.
    z = jnp.dot(xs, wj, preferred_element_type=jnp.float32)        # (R, p2C)

    # Narrow grouped-LN statistics on the MXU (lane-dense; no (.., p2, C)
    # reshapes).  Both reductions issue back-to-back on z and z*z.
    msum = msum_ref[...]
    mean_n = jnp.dot(z, msum, preferred_element_type=jnp.float32)   # (R, 128)
    ex2_n = jnp.dot(z * z, msum, preferred_element_type=jnp.float32)
    var_n = jnp.maximum(ex2_n - mean_n * mean_n, 0.0)
    inv_n = lax.rsqrt(var_n + eps)                                  # narrow rsqrt

    # Broadcast narrow stats back across each group's C lanes (MXU slack).
    bcast = bcast_ref[...]
    mean_b = jnp.dot(mean_n, bcast, preferred_element_type=jnp.float32)
    inv_b = jnp.dot(inv_n, bcast, preferred_element_type=jnp.float32)

    o = (z - mean_b) * inv_b * g_ref[...] + b_ref[...]
    # (tbh*W, p2C) -> (tbh, W, p2C); layout-preserving when W satisfies the
    # sublane multiple (always true for the common W % 8 == 0 geometries).
    o_ref[...] = o.reshape(tbh, wdim, p2c).astype(o_ref.dtype)


def final_patch_expand_x4(x, w, gamma, beta, *, input_resolution, dim_scale,
                          eps=1e-5, tbh=None, matmul_dtype=None):
    """x: (B, H*W, C); w: (C, p1*p2*C) (transposed Linear weight, no bias);
    gamma/beta: (C,).  Returns (B, H*p1 * W*p2, C)."""
    B, L, C = x.shape
    H, W = input_resolution
    p1, p2 = dim_scale
    assert L == H * W, "input feature has wrong size"
    C_out = p1 * p2 * C
    p2C = p2 * C
    BH = B * H
    N = B * L

    # bf16 MXU inputs (f32 accumulation) once the op stops being purely
    # HBM-write-bound; keep f32 for small C / f32 activations to preserve
    # exact numerics.  (Small, documented numerics change when enabled.)
    if matmul_dtype is None:
        matmul_dtype = (jnp.bfloat16
                        if (x.dtype == jnp.bfloat16 or C >= 64)
                        else x.dtype)
    matmul_dtype = jnp.dtype(matmul_dtype)

    x_isize = jnp.dtype(x.dtype).itemsize
    mm_isize = matmul_dtype.itemsize
    out_isize = x_isize

    # ---------------- VMEM budgeting (per-generation capacity) -------------
    fixed = (2 * C * p2C * mm_isize                        # weight slab (dbl-buf)
             + 2 * (p2C * 128 + 128 * p2C + 2 * p2C) * 4)  # stat mats + gamma/beta
    per_row = (2 * W * C * x_isize          # token tile (dbl-buf)
               + 2 * W * p2C * out_isize    # output tile (dbl-buf)
               + 4 * W * p2C * 4            # in-kernel f32 temps (z, temps, o)
               + W * C * mm_isize)          # in-kernel cast of the token tile
    cap = _vmem_capacity_bytes()
    if cap <= (64 << 20):                   # v7x-class: 64 MiB physical VMEM
        budget, limit_cap = 26 << 20, 40 << 20
    else:                                   # v5e / v6e: 128 MiB physical VMEM
        budget, limit_cap = 64 << 20, 96 << 20

    if tbh is None:
        tbh = max(1, (budget - fixed) // per_row)
        tbh = int(min(tbh, BH))
        # Keep >= ~8 total pipeline steps and >= 2 steps on the sharded bh
        # axis so writeback overlaps compute and megacore can split.
        min_i_steps = max(2, _cdiv(8, p1))
        tbh = max(1, min(tbh, _cdiv(BH, min_i_steps)))
    tbh = int(max(1, min(int(tbh), BH)))

    # Sublane alignment of the (tbh*W, C) input block (8 rows for 4-byte,
    # 16 for 2-byte dtypes) unless the block spans the full (B*H*W) axis.
    sub = {4: 8, 2: 16, 1: 32}.get(x_isize, 8)
    if tbh < BH and (tbh * W) % sub != 0:
        step = sub // math.gcd(W, sub)
        tbh_dn = (tbh // step) * step
        tbh = tbh_dn if tbh_dn >= step else min(step, BH)
        if (tbh * W) % sub != 0 and tbh != BH:
            tbh = BH                        # full extent is always legal

    vmem_est = fixed + tbh * per_row
    vmem_limit = int(min(limit_cap, max(32 << 20, vmem_est + (4 << 20))))

    # ---------------- Operand prep (tiny one-time transforms) --------------
    x2d = x.reshape(N, C)
    # (C, p1*p2*C) -> (p1, C, p2*C): one weight slab per p1 group (grid-j).
    # In a real model do this once at parameter-load time.
    w3 = jnp.transpose(w.reshape(C, p1, p2C), (1, 0, 2))
    if w3.dtype != matmul_dtype:
        w3 = w3.astype(matmul_dtype)
    g2 = jnp.tile(gamma.astype(jnp.float32), p2).reshape(1, p2C)
    b2 = jnp.tile(beta.astype(jnp.float32), p2).reshape(1, p2C)
    grp = jnp.arange(p2C, dtype=jnp.int32) // C            # lane -> group id
    lane = jnp.arange(128, dtype=jnp.int32)
    msum = (grp[:, None] == lane[None, :]).astype(jnp.float32) / float(C)
    bcast = (lane[:, None] == grp[None, :]).astype(jnp.float32)

    grid = (_cdiv(BH, tbh), p1)
    kernel = functools.partial(_expand_norm_kernel, eps=float(eps),
                               matmul_dtype=matmul_dtype)

    flops = 2 * N * C * C_out + 8 * N * C_out * 128
    bytes_accessed = (N * C * x_isize + N * C_out * out_isize
                      + grid[0] * C * C_out * mm_isize
                      + 2 * p2C * 128 * 4)

    # TODO(synk): for very large C (>= ~2048) add a K-tiling grid axis over
    # the contraction dim; typical decoder dims keep the (C, p2C) slab tiny.
    # TODO(synk): single-buffer the constant-index stat/affine operands via
    # pipeline_mode=pl.Buffered(1) once verified on the target jax version.
    out4 = pl.pallas_call(
        kernel,
        out_shape=jax.ShapeDtypeStruct((BH, p1, W, p2C), x.dtype),
        grid_spec=pltpu.PrefetchScalarGridSpec(
            num_scalar_prefetch=0,
            grid=grid,
            in_specs=[
                pl.BlockSpec((tbh * W, C), lambda i, j: (i, 0)),
                pl.BlockSpec((None, C, p2C), lambda i, j: (j, 0, 0)),
                pl.BlockSpec((p2C, 128), lambda i, j: (0, 0)),
                pl.BlockSpec((128, p2C), lambda i, j: (0, 0)),
                pl.BlockSpec((1, p2C), lambda i, j: (0, 0)),
                pl.BlockSpec((1, p2C), lambda i, j: (0, 0)),
            ],
            out_specs=pl.BlockSpec((tbh, None, W, p2C),
                                   lambda i, j: (i, j, 0, 0)),
        ),
        compiler_params=pltpu.CompilerParams(
            dimension_semantics=("parallel", "arbitrary"),
            vmem_limit_bytes=vmem_limit),
        cost_estimate=pl.CostEstimate(flops=flops,
                                      transcendentals=N * p1 * 128,
                                      bytes_accessed=bytes_accessed),
    )(x2d, w3, msum, bcast, g2, b2)

    # (B*H, p1, W, p2*C) is already contiguous in (b, h, p1, w, p2, c) order:
    # this reshape is metadata-only (no HBM traffic).
    return out4.reshape(B, H * p1 * W * p2, C)


def final_patch_expand_x4_ref(x, w, gamma, beta, *, input_resolution,
                              dim_scale, eps=1e-5):
    """Pure-JAX reference mirroring the PyTorch forward exactly."""
    B, L, C = x.shape
    H, W = input_resolution
    p1, p2 = dim_scale
    y = x @ w                                          # Linear, no bias
    y = y.reshape(B, H, W, p1, p2, C)
    y = jnp.transpose(y, (0, 1, 3, 2, 4, 5)).reshape(B, H * p1 * W * p2, C)
    yf = y.astype(jnp.float32)
    mean = jnp.mean(yf, axis=-1, keepdims=True)
    var = jnp.mean((yf - mean) ** 2, axis=-1, keepdims=True)
    out = (yf - mean) * lax.rsqrt(var + eps) * gamma + beta
    return out.astype(x.dtype)


if __name__ == "__main__":
    key = jax.random.PRNGKey(0)
    k_x, k_w, k_g, k_b = jax.random.split(key, 4)

    # Small shapes consistent with the module.
    B = 2
    H = W = 16
    dim = 32
    dim_scale = (4, 4)
    input_resolution = (H, W)

    x = jax.random.normal(k_x, (B, H * W, dim), dtype=jnp.float32)
    # nn.Linear(dim, p1*p2*dim, bias=False): weight (out, in); store transposed.
    w = (jax.random.normal(k_w, (dim, dim_scale[0] * dim_scale[1] * dim),
                           dtype=jnp.float32) * 0.05)
    gamma = 1.0 + 0.1 * jax.random.normal(k_g, (dim,), dtype=jnp.float32)
    beta = 0.1 * jax.random.normal(k_b, (dim,), dtype=jnp.float32)

    ref = final_patch_expand_x4_ref(x, w, gamma, beta,
                                    input_resolution=input_resolution,
                                    dim_scale=dim_scale)

    # Explicit small tile -> multi-step grid over both axes.
    out = final_patch_expand_x4(x, w, gamma, beta,
                                input_resolution=input_resolution,
                                dim_scale=dim_scale, tbh=8)
    out = jax.block_until_ready(out)
    assert out.shape == (B, H * dim_scale[0] * W * dim_scale[1], dim)
    assert jnp.allclose(out, ref, atol=2e-4, rtol=2e-4), "mismatch (tbh=8)"

    # Auto-selected tile size (derived from the device's VMEM capacity).
    out2 = final_patch_expand_x4(x, w, gamma, beta,
                                 input_resolution=input_resolution,
                                 dim_scale=dim_scale)
    out2 = jax.block_until_ready(out2)
    assert jnp.allclose(out2, ref, atol=2e-4, rtol=2e-4), "mismatch (auto)"

    # bf16 end-to-end I/O: the 16x-expanded output dominates HBM traffic, so
    # halving its element size is ~2x wall-clock on the write-bound shapes.
    xb = x.astype(jnp.bfloat16)
    wb = w.astype(jnp.bfloat16)
    ref_bf = final_patch_expand_x4_ref(xb, wb, gamma, beta,
                                       input_resolution=input_resolution,
                                       dim_scale=dim_scale)
    out_bf = final_patch_expand_x4(xb, wb, gamma, beta,
                                   input_resolution=input_resolution,
                                   dim_scale=dim_scale)
    out_bf = jax.block_until_ready(out_bf)
    assert out_bf.dtype == jnp.bfloat16
    assert jnp.allclose(out_bf.astype(jnp.float32),
                        ref_bf.astype(jnp.float32),
                        atol=1e-1, rtol=1e-1), "mismatch (bf16)"

    print("KERNEL_OK")
</pallas_src>

<mosaic_0001>
module attributes {stable_mosaic.version = 11 : i64} {
  func.func @_expand_norm_kernel(%arg0: i32, %arg1: i32, %arg2: memref<128x32xf32, #tpu.memory_space<vmem>>, %arg3: memref<1x32x128xf32, #tpu.memory_space<vmem>>, %arg4: memref<128x128xf32, #tpu.memory_space<vmem>>, %arg5: memref<128x128xf32, #tpu.memory_space<vmem>>, %arg6: memref<1x128xf32, #tpu.memory_space<vmem>>, %arg7: memref<1x128xf32, #tpu.memory_space<vmem>>, %arg8: memref<8x1x16x128xf32, #tpu.memory_space<vmem>>) attributes {dimension_semantics = [#tpu.dimension_semantics<parallel>, #tpu.dimension_semantics<arbitrary>], iteration_bounds = array<i64: 4, 4>, scalar_prefetch = 0 : i64, scratch_operands = 0 : i64, tpu.core_type = #tpu.core_type<tc>, window_params = [{transform_indices = @transform_0, window_bounds = array<i64: 128, 32>}, {transform_indices = @transform_1, window_bounds = array<i64: 1, 32, 128>}, {pipeline_mode = #tpu.pipeline_mode<synchronous>, transform_indices = @transform_2, window_bounds = array<i64: 128, 128>}, {pipeline_mode = #tpu.pipeline_mode<synchronous>, transform_indices = @transform_3, window_bounds = array<i64: 128, 128>}, {pipeline_mode = #tpu.pipeline_mode<synchronous>, transform_indices = @transform_4, window_bounds = array<i64: 1, 128>}, {pipeline_mode = #tpu.pipeline_mode<synchronous>, transform_indices = @transform_5, window_bounds = array<i64: 1, 128>}, {transform_indices = @transform_6, window_bounds = array<i64: 8, 1, 16, 128>}]} {
    %c0 = arith.constant 0 : index
    %c0_0 = arith.constant 0 : index
    %0 = vector.load %arg2[%c0, %c0_0] : memref<128x32xf32, #tpu.memory_space<vmem>>, vector<128x32xf32>
    %c0_1 = arith.constant 0 : index
    %c0_2 = arith.constant 0 : index
    %c0_3 = arith.constant 0 : index
    %1 = vector.load %arg3[%c0_1, %c0_2, %c0_3] : memref<1x32x128xf32, #tpu.memory_space<vmem>>, vector<1x32x128xf32>
    %2 = vector.shape_cast %1 : vector<1x32x128xf32> to vector<32x128xf32>
    %cst = arith.constant dense<0.000000e+00> : vector<128x128xf32>
    %3 = tpu.matmul %0, %2, %cst {dimension_numbers = #tpu.dot_dimension_numbers<[1], [0], [0], [1], [0, 0, 1, 1], [], []>} : vector<128x32xf32>, vector<32x128xf32>, vector<128x128xf32> -> vector<128x128xf32>
    %c0_4 = arith.constant 0 : index
    %c0_5 = arith.constant 0 : index
    %4 = vector.load %arg4[%c0_4, %c0_5] : memref<128x128xf32, #tpu.memory_space<vmem>>, vector<128x128xf32>
    %cst_6 = arith.constant dense<0.000000e+00> : vector<128x128xf32>
    %5 = tpu.matmul %3, %4, %cst_6 {dimension_numbers = #tpu.dot_dimension_numbers<[1], [0], [0], [1], [0, 0, 1, 1], [], []>} : vector<128x128xf32>, vector<128x128xf32>, vector<128x128xf32> -> vector<128x128xf32>
    %6 = arith.mulf %3, %3 : vector<128x128xf32>
    %cst_7 = arith.constant dense<0.000000e+00> : vector<128x128xf32>
    %7 = tpu.matmul %6, %4, %cst_7 {dimension_numbers = #tpu.dot_dimension_numbers<[1], [0], [0], [1], [0, 0, 1, 1], [], []>} : vector<128x128xf32>, vector<128x128xf32>, vector<128x128xf32> -> vector<128x128xf32>
    %8 = arith.mulf %5, %5 : vector<128x128xf32>
    %9 = arith.subf %7, %8 : vector<128x128xf32>
    %cst_8 = arith.constant 0.000000e+00 : f32
    %10 = vector.broadcast %cst_8 : f32 to vector<128x128xf32>
    %11 = arith.maximumf %9, %10 : vector<128x128xf32>
    %cst_9 = arith.constant 9.99999974E-6 : f32
    %12 = vector.broadcast %cst_9 : f32 to vector<128x128xf32>
    %13 = arith.addf %11, %12 : vector<128x128xf32>
    %14 = math.rsqrt %13 : vector<128x128xf32>
    %c0_10 = arith.constant 0 : index
    %c0_11 = arith.constant 0 : index
    %15 = vector.load %arg5[%c0_10, %c0_11] : memref<128x128xf32, #tpu.memory_space<vmem>>, vector<128x128xf32>
    %cst_12 = arith.constant dense<0.000000e+00> : vector<128x128xf32>
    %16 = tpu.matmul %5, %15, %cst_12 {dimension_numbers = #tpu.dot_dimension_numbers<[1], [0], [0], [1], [0, 0, 1, 1], [], []>} : vector<128x128xf32>, vector<128x128xf32>, vector<128x128xf32> -> vector<128x128xf32>
    %cst_13 = arith.constant dense<0.000000e+00> : vector<128x128xf32>
    %17 = tpu.matmul %14, %15, %cst_13 {dimension_numbers = #tpu.dot_dimension_numbers<[1], [0], [0], [1], [0, 0, 1, 1], [], []>} : vector<128x128xf32>, vector<128x128xf32>, vector<128x128xf32> -> vector<128x128xf32>
    %18 = arith.subf %3, %16 : vector<128x128xf32>
    %19 = arith.mulf %18, %17 : vector<128x128xf32>
    %c0_14 = arith.constant 0 : index
    %c0_15 = arith.constant 0 : index
    %20 = vector.load %arg6[%c0_14, %c0_15] : memref<1x128xf32, #tpu.memory_space<vmem>>, vector<1x128xf32>
    %21 = vector.broadcast %20 : vector<1x128xf32> to vector<128x128xf32>
    %22 = arith.mulf %19, %21 : vector<128x128xf32>
    %c0_16 = arith.constant 0 : index
    %c0_17 = arith.constant 0 : index
    %23 = vector.load %arg7[%c0_16, %c0_17] : memref<1x128xf32, #tpu.memory_space<vmem>>, vector<1x128xf32>
    %24 = vector.broadcast %23 : vector<1x128xf32> to vector<128x128xf32>
    %25 = arith.addf %22, %24 : vector<128x128xf32>
    %26 = vector.shape_cast %25 : vector<128x128xf32> to vector<8x16x128xf32>
    %c0_18 = arith.constant 0 : index
    %c0_19 = arith.constant 0 : index
    %c0_20 = arith.constant 0 : index
    %c0_21 = arith.constant 0 : index
    %27 = vector.load %arg8[%c0_18, %c0_19, %c0_20, %c0_21] : memref<8x1x16x128xf32, #tpu.memory_space<vmem>>, vector<8x1x16x128xf32>
    %28 = vector.shape_cast %27 : vector<8x1x16x128xf32> to vector<8x16x128xf32>
    %29 = vector.shape_cast %26 : vector<8x16x128xf32> to vector<8x1x16x128xf32>
    tpu.vector_store %arg8[%c0_18, %c0_19, %c0_20, %c0_21], %29 {strides = array<i32>} : memref<8x1x16x128xf32, #tpu.memory_space<vmem>>, vector<8x1x16x128xf32>,
    return
  }
  func.func @transform_0(%arg0: i32, %arg1: i32) -> (i32, i32) {
    %c0_i32 = arith.constant 0 : i32
    %c0_i32_0 = arith.constant 0 : i32
    return %arg0, %c0_i32 : i32, i32
  }
  func.func @transform_1(%arg0: i32, %arg1: i32) -> (i32, i32, i32) {
    %c0_i32 = arith.constant 0 : i32
    %c0_i32_0 = arith.constant 0 : i32
    %c0_i32_1 = arith.constant 0 : i32
    return %arg1, %c0_i32, %c0_i32_0 : i32, i32, i32
  }
  func.func @transform_2(%arg0: i32, %arg1: i32) -> (i32, i32) {
    %c0_i32 = arith.constant 0 : i32
    %c0_i32_0 = arith.constant 0 : i32
    %c0_i32_1 = arith.constant 0 : i32
    return %c0_i32, %c0_i32_0 : i32, i32
  }
  func.func @transform_3(%arg0: i32, %arg1: i32) -> (i32, i32) {
    %c0_i32 = arith.constant 0 : i32
    %c0_i32_0 = arith.constant 0 : i32
    %c0_i32_1 = arith.constant 0 : i32
    return %c0_i32, %c0_i32_0 : i32, i32
  }
  func.func @transform_4(%arg0: i32, %arg1: i32) -> (i32, i32) {
    %c0_i32 = arith.constant 0 : i32
    %c0_i32_0 = arith.constant 0 : i32
    %c0_i32_1 = arith.constant 0 : i32
    return %c0_i32, %c0_i32_0 : i32, i32
  }
  func.func @transform_5(%arg0: i32, %arg1: i32) -> (i32, i32) {
    %c0_i32 = arith.constant 0 : i32
    %c0_i32_0 = arith.constant 0 : i32
    %c0_i32_1 = arith.constant 0 : i32
    return %c0_i32, %c0_i32_0 : i32, i32
  }
  func.func @transform_6(%arg0: i32, %arg1: i32) -> (i32, i32, i32, i32) {
    %c0_i32 = arith.constant 0 : i32
    %c0_i32_0 = arith.constant 0 : i32
    %c0_i32_1 = arith.constant 0 : i32
    return %arg0, %arg1, %c0_i32, %c0_i32_0 : i32, i32, i32, i32
  }
}

</mosaic_0001>

<bundles_post_ra>
// kernel: tpu_custom_call.1
= control target key start
LH: loop header
LB: loop body
LE: loop exit
PB: predicated region body
PF: predicated region fallthrough
CT: control target
= control target key end

     0   :  { %s2677_s0 = inlined_call_operand.vmem [shape: f32[512,32], index: 0, kind: input, shape index: {}]   ;;  %s2678_s1 = inlined_call_operand.vmem [shape: f32[4,32,128], index: 1, kind: input, shape index: {}]   ;;  %s2679_s2 = inlined_call_operand.vmem [shape: f32[128,128], index: 2, kind: input, shape index: {}]   ;;  %s2680_s3 = inlined_call_operand.vmem [shape: f32[128,128], index: 3, kind: input, shape index: {}]   ;;  %s2681_s4 = inlined_call_operand.vmem [shape: f32[1,128], index: 4, kind: input, shape index: {}]   ;;  %s2682_s5 = inlined_call_operand.vmem [shape: f32[1,128], index: 5, kind: input, shape index: {}]   ;;  %s2683_s6 = inlined_call_operand.hbm [shape: f32[32,4,16,128], index: 6, kind: output, shape index: {}]  }
   0x1   :  { %2685 = sst [smem:[#allocation8_spill]] %s2677_s0 }
   0x2   :  { %11 = vsyncpa [#allocation3], 0 }
   0x3   :  { %13 = vsyncpa [#allocation3 + $0x1], 0  ;;  %s2130_s21 = smov 0   ;;  %s2132_s22 = smov 0  }
   0x4   :  { %s2134_s23 = smov 0   ;;  %s2136_s24 = smov 0  }
   0x5   :  { %s2138_s25 = smov 0   ;;  %s2140_s26 = smov 0  }
   0x6   :  { %s2142_s27 = smov 0   ;;  %s2144_s28 = smov 0  }
   0x7 LB: > { %s1431_s29 = sadd.s32 4294967295, %s2086_s28   ;;  %s1432_s30 = sadd.s32 4294967294, %s2086_s28   ;;  %s2086_s28 = sphi %s2144_s28, %s19_s28   ;;  %s2082_s27 = sphi %s2142_s27, %s2697_s27   ;;  %s2078_s26 = sphi %s2140_s26, %s2696_s26   ;;  %s2074_s25 = sphi %s2138_s25, %s2695_s25   ;;  %s2070_s24 = sphi %s2136_s24, %s2694_s24   ;;  %s2066_s23 = sphi %s2134_s23, %s2693_s23   ;;  %s2062_s22 = sphi %s2132_s22, %s2692_s22   ;;  %s2058_s21 = sphi %s2130_s21, %s2691_s21  }
   0x8   : > { %s28_s7 = sadd.s32 1, %s2078_s26  ;;  %s31_s8 = sadd.s32 1, %s2082_s27 }
   0x9   : > { %p29_p0 = scmp.ge.s32.totalorder %s28_s7, 4  ;;  %p186_p1 = scmp.ne.s32.totalorder %s2066_s23, %s2062_s22 }
   0xa   : > { %p187_p2 = scmp.eq.s32.totalorder %s1431_s29, 15  ;;  %p192_p5 = scmp.ne.s32.totalorder %s2062_s22, %s2058_s21 }
   0xb   : > { %s2699_s7 = smov (%p29_p0, %s28_s7), 0  ;;  %s2701_s8 = smov (!%p29_p0, %s31_s8), %s2082_s27 }
   0xc   : > { %s172_s9 = ssub.s32 %s2078_s26, %s2699_s7  ;;  %p2181_p3 = por %p187_p2, %p186_p1 }
   0xd   : > { %p33_p4 = scmp.ge.s32.totalorder %s2701_s8, 4  ;;  %p193_p6 = scmp.eq.s32.totalorder %s1432_s30, 15 }
   0xe   : > { %p1435_p7 = scmp.ge.s32.totalorder %s2086_s28, 1  ;;  %p240_p9 = scmp.lt.s32.totalorder %s2086_s28, 17 }
   0xf   : > { %s2703_s8 = smov (%p33_p4, %s2701_s8), 0  ;;  %p2190_p8 = por %p193_p6, %p192_p5 }
  0x10   : > { %2687 = sst [smem:[#allocation7_spill]] %s2703_s8  ;;  %s171_s12 = ssub.s32 %s2082_s27, %s2703_s8 }
  0x11   : > { %s176_s13 = sadd.s32 1, %s2066_s23  ;;  %s173_s14 = sor.u32 %s172_s9, %s171_s12 }
  0x12   : > { %p241_p10 = pnand %p1435_p7, %p240_p9  ;;  %p174_p11 = scmp.eq.s32.totalorder %s173_s14, 0 }
  0x13   : > { %p281_p12 = scmp.lt.s32.totalorder (!%p241_p10), %s2070_s24, 3  ;;  %s1437_s16 = sshll.u32 (!%p241_p10), %s2074_s25, 4 }
  0x14   : > { %s2199_s15 = scalar_select %p174_p11, %s2066_s23, %s176_s13  }
  0x15   : > { %244 = sbr.rel (%p241_p10) target bundleno = 696 (0x2b8), region = 44  ;;  %p276_p13 = scmp.lt.s32.totalorder (!%p241_p10), %s1437_s16, 63 }
  0x16   : > { %s2689_s0 = sld [smem:[#allocation8_spill]] (!%p241_p10) }
  0x1a   : > { %v516_v0 = vld [vmem:[%s2679_s2 + $0x78] sm:$0xff]  ;;  %v515_v1 = vld [vmem:[%s2679_s2 + $0x70] sm:$0xff]  ;;  %s282_s29 = scalar_select %p281_p12, %s2070_s24, 3  ;;  %v514_v2 = vld [vmem:[%s2679_s2 + $0x68] sm:$0xff]  ;;  %vm307_vm0 = vcmask 261120  }
  0x1b   : > { %1648 = vmatprep.subr.mxu1 %v516_v0  ;;  %s2705_s16 = smov (!%p276_p13, %s1437_s16), 63  ;;  %v513_v3 = vld [vmem:[%s2679_s2 + $0x60] sm:$0xff]  ;;  %v512_v7 = vld [vmem:[%s2679_s2 + $0x58] sm:$0xff]  ;;  %v511_v9 = vld [vmem:[%s2679_s2 + $0x50] sm:$0xff] }
  0x1c   : > { %1649 = vmatpush3.msra.mxu1 %v516_v0  ;;  %s1466_s12 = sshll.u32 %s282_s29, 5  ;;  %s1438_s20 = sshll.u32 %s2705_s16, 3  ;;  %v510_v11 = vld [vmem:[%s2679_s2 + $0x48] sm:$0xff]  ;;  %v509_v14 = vld [vmem:[%s2679_s2 + $0x40] sm:$0xff]  ;;  %v508_v17 = vld [vmem:[%s2679_s2 + $0x38] sm:$0xff] }
  0x1d   : > { %1650 = vmatprep.subr.mxu1 %v515_v1  ;;  %s285_s19 = scalar_lea.vmem %s2678_s1, %s1466_s12  ;;  %s2222_s9 = scalar_lea.vmem %s2689_s0, %s1438_s20  ;;  %v507_v20 = vld [vmem:[%s2679_s2 + $0x30] sm:$0xff]  ;;  %v506_v23 = vld [vmem:[%s2679_s2 + $0x28] sm:$0xff]  ;;  %v505_v26 = vld [vmem:[%s2679_s2 + $0x20] sm:$0xff] }
  0x1e   : > { %1651 = vmatpush3.msra.mxu1 %v515_v1  ;;  %v306_v4 = vld [vmem:[%s285_s19 + $0x18] sm:$0xff]  ;;  %v305_v5 = vld [vmem:[%s285_s19 + $0x10] sm:$0xff]  ;;  %v287_v6 = vld [vmem:[%s2222_s9] sm:$0xff]  ;;  %s272_s20 = sand.u32 1, %s2062_s22  }
  0x1f   : > { %1652 = vmatprep.subr.mxu1 %v514_v2  ;;  %1616 = vmatprep.subr.mxu0 %v306_v4  ;;  %v304_v8 = vld [vmem:[%s285_s19 + $0x8] sm:$0xff]  ;;  %v303_v10 = vld [vmem:[%s285_s19] sm:$0xff]  ;;  %v289_v13 = vld [vmem:[%s2222_s9 + $0x10] sm:$0xff]  ;;  %s1436_s13 = sshll.u32 %s272_s20, 7  ;;  %s1304_s12 = scalar_lea.sflag [#allocation3], %s272_s20 }
  0x20   : > { %1653 = vmatpush3.msra.mxu1 %v514_v2  ;;  %1617 = vmatpush3.msra.mxu0 %v306_v4  ;;  %v288_v12 = vld [vmem:[%s2222_s9 + $0x8] sm:$0xff]  ;;  %v290_v15 = vld [vmem:[%s2222_s9 + $0x18] sm:$0xff]  ;;  %v291_v16 = vld [vmem:[%s2222_s9 + $0x20] sm:$0xff]  ;;  %s2568_s16 = scalar_lea.vmem [#allocation2], %s1436_s13 }
  0x21   : > { %1654 = vmatprep.subr.mxu1 %v513_v3  ;;  %1624 = vmatprep.mubr.msk.f32.mxu0 %vm307_vm0, %v287_v6  ;;  %v292_v18 = vld [vmem:[%s2222_s9 + $0x28] sm:$0xff]  ;;  %v293_v19 = vld [vmem:[%s2222_s9 + $0x30] sm:$0xff]  ;;  %v294_v21 = vld [vmem:[%s2222_s9 + $0x38] sm:$0xff] }
  0x22   : > { %1618 = vmatprep.subr.mxu0 %v305_v5  ;;  %1655 = vmatpush3.msra.mxu1 %v513_v3  ;;  %v295_v22 = vld [vmem:[%s2222_s9 + $0x40] sm:$0xff]  ;;  %v296_v24 = vld [vmem:[%s2222_s9 + $0x48] sm:$0xff]  ;;  %v297_v25 = vld [vmem:[%s2222_s9 + $0x50] sm:$0xff] }
  0x23   : > { %1619 = vmatpush3.msra.mxu0 %v305_v5  ;;  %1656 = vmatprep.subr.mxu1 %v512_v7  ;;  %v298_v27 = vld [vmem:[%s2222_s9 + $0x58] sm:$0xff]  ;;  %v299_v28 = vld [vmem:[%s2222_s9 + $0x60] sm:$0xff]  ;;  %v300_v30 = vld [vmem:[%s2222_s9 + $0x68] sm:$0xff] }
  0x24   : > { %1620 = vmatprep.subr.mxu0 %v304_v8  ;;  %1657 = vmatpush3.msra.mxu1 %v512_v7  ;;  %v504_v29 = vld [vmem:[%s2679_s2 + $0x18] sm:$0xff]  ;;  %v301_v31 = vld [vmem:[%s2222_s9 + $0x70] sm:$0xff]  ;;  %v502_v34 = vld [vmem:[%s2679_s2 + $0x8] sm:$0xff] }
  0x25   : > { %1621 = vmatpush3.msra.mxu0 %v304_v8  ;;  %1658 = vmatprep.subr.mxu1 %v511_v9  ;;  %v503_v32 = vld [vmem:[%s2679_s2 + $0x10] sm:$0xff]  ;;  %v302_v33 = vld [vmem:[%s2222_s9 + $0x78] sm:$0xff]  ;;  %v501_v35 = vld [vmem:[%s2679_s2] sm:$0xff] }
  0x26   : > { %1622 = vmatprep.subr.mxu0 %v303_v10  ;;  %1659 = vmatpush3.msra.mxu1 %v511_v9  ;;  %v2295_v36 = vld [vmem:[%s2680_s3 + $0x78] sm:$0xff]  ;;  %v2309_v40 = vld [vmem:[%s2680_s3 + $0x70] sm:$0xff]  ;;  %v2320_v43 = vld [vmem:[%s2680_s3 + $0x68] sm:$0xff] }
  0x27   : > { %1623 = vmatpush3.msra.mxu0 %v303_v10  ;;  %1660 = vmatprep.subr.mxu1 %v510_v11  ;;  %v2332_v46 = vld [vmem:[%s2680_s3 + $0x60] sm:$0xff]  ;;  %v2344_v49 = vld [vmem:[%s2680_s3 + $0x58] sm:$0xff]  ;;  %v2356_v52 = vld [vmem:[%s2680_s3 + $0x50] sm:$0xff] }
  0x28   : > { %1625 = vmatmul.mubr.msk.f32.vlgmr.msra.gmra.mxu0 %vm307_vm0, %v288_v12  ;;  %1704 = vmatprep.subr.mxu0 %v516_v0  ;;  %v2368_v55 = vld [vmem:[%s2680_s3 + $0x48] sm:$0xff]  ;;  %v2380_v58 = vld [vmem:[%s2680_s3 + $0x40] sm:$0xff]  ;;  %v2392_v61 = vld [vmem:[%s2680_s3 + $0x38] sm:$0xff] }
  0x29   : > { %1627 = vmatprep.mubr.msk.f32.mxu0 %vm307_vm0, %v289_v13  ;;  %1705 = vmatpush3.msra.mxu0 %v516_v0  ;;  %v2404_v0 = vld [vmem:[%s2680_s3 + $0x30] sm:$0xff]  ;;  %v2428_v6 = vld [vmem:[%s2680_s3 + $0x20] sm:$0xff]  ;;  %v2443_v10 = vld [vmem:[%s2680_s3 + $0x18] sm:$0xff] }
  0x2a   : > { %1706 = vmatprep.subr.mxu0 %v515_v1  ;;  %1661 = vmatpush3.msra.mxu1 %v510_v11 }
  0x2b   : > { %1707 = vmatpush3.msra.mxu0 %v515_v1  ;;  %1662 = vmatprep.subr.mxu1 %v509_v14 }
  0x2c   : > { %1628 = vmatmul.mubr.msk.f32.gmra.mxu0 %vm307_vm0, %v290_v15  ;;  %1708 = vmatprep.subr.mxu0 %v514_v2  ;;  %v2462_v15 = vld [vmem:[%s2680_s3 + $0x10] sm:$0xff] }
  0x2d   : > { %1630 = vmatprep.mubr.msk.f32.mxu0 %vm307_vm0, %v291_v16  ;;  %1709 = vmatpush3.msra.mxu0 %v514_v2 }
  0x2e   : > { %1710 = vmatprep.subr.mxu0 %v513_v3  ;;  %1663 = vmatpush3.msra.mxu1 %v509_v14 }
  0x2f   : > { %1711 = vmatpush3.msra.mxu0 %v513_v3  ;;  %1664 = vmatprep.subr.mxu1 %v508_v17  ;;  %v2416_v3 = vld [vmem:[%s2680_s3 + $0x28] sm:$0xff] }
  0x30   : > { %1631 = vmatmul.mubr.msk.f32.gmra.mxu0 %vm307_vm0, %v292_v18  ;;  %1712 = vmatprep.subr.mxu0 %v512_v7  ;;  %v2501_v18 = vld [vmem:[%s2680_s3 + $0x8] sm:$0xff] }
  0x31   : > { %1633 = vmatprep.mubr.msk.f32.mxu0 %vm307_vm0, %v293_v19  ;;  %1713 = vmatpush3.msra.mxu0 %v512_v7  ;;  %v2509_v19 = vld [vmem:[%s2680_s3] sm:$0xff] }
  0x32   : > { %1714 = vmatprep.subr.mxu0 %v511_v9  ;;  %1665 = vmatpush3.msra.mxu1 %v508_v17 }
  0x33   : > { %1715 = vmatpush3.msra.mxu0 %v511_v9  ;;  %1666 = vmatprep.subr.mxu1 %v507_v20 }
  0x34   : > { %1634 = vmatmul.mubr.msk.f32.gmra.mxu0 %vm307_vm0, %v294_v21  ;;  %1716 = vmatprep.subr.mxu0 %v510_v11 }
  0x35   : > { %1636 = vmatprep.mubr.msk.f32.mxu0 %vm307_vm0, %v295_v22  ;;  %1717 = vmatpush3.msra.mxu0 %v510_v11 }
  0x36   : > { %1718 = vmatprep.subr.mxu0 %v509_v14  ;;  %1667 = vmatpush3.msra.mxu1 %v507_v20 }
  0x37   : > { %1719 = vmatpush3.msra.mxu0 %v509_v14  ;;  %1668 = vmatprep.subr.mxu1 %v506_v23 }
  0x38   : > { %1637 = vmatmul.mubr.msk.f32.gmra.mxu0 %vm307_vm0, %v296_v24  ;;  %1720 = vmatprep.subr.mxu0 %v508_v17 }
  0x39   : > { %1639 = vmatprep.mubr.msk.f32.mxu0 %vm307_vm0, %v297_v25  ;;  %1721 = vmatpush3.msra.mxu0 %v508_v17 }
  0x3a   : > { %1722 = vmatprep.subr.mxu0 %v507_v20  ;;  %1669 = vmatpush3.msra.mxu1 %v506_v23 }
  0x3b   : > { %1723 = vmatpush3.msra.mxu0 %v507_v20  ;;  %1670 = vmatprep.subr.mxu1 %v505_v26 }
  0x3c   : > { %1640 = vmatmul.mubr.msk.f32.gmra.mxu0 %vm307_vm0, %v298_v27  ;;  %1724 = vmatprep.subr.mxu0 %v506_v23 }
  0x3d   : > { %1642 = vmatprep.mubr.msk.f32.mxu0 %vm307_vm0, %v299_v28  ;;  %1725 = vmatpush3.msra.mxu0 %v506_v23 }
  0x3e   : > { %1671 = vmatpush3.msra.mxu1 %v505_v26  ;;  %1726 = vmatprep.subr.mxu0 %v505_v26 }
  0x3f   : > { %1672 = vmatprep.subr.mxu1 %v504_v29  ;;  %1727 = vmatpush3.msra.mxu0 %v505_v26 }
  0x40   : > { %1643 = vmatmul.mubr.msk.f32.gmra.mxu0 %vm307_vm0, %v300_v30  ;;  %1673 = vmatpush3.msra.mxu1 %v504_v29 }
  0x41   : > { %1645 = vmatprep.mubr.msk.f32.mxu0 %vm307_vm0, %v301_v31  ;;  %1728 = vmatprep.subr.mxu0 %v504_v29 }
  0x42   : > { %1674 = vmatprep.subr.mxu1 %v503_v32  ;;  %1729 = vmatpush3.msra.mxu0 %v504_v29 }
  0x43   : > { %1675 = vmatpush3.msra.mxu1 %v503_v32  ;;  %1730 = vmatprep.subr.mxu0 %v503_v32 }
  0x44   : > { %1646 = vmatmul.mubr.msk.f32.gmra.mxu0 %vm307_vm0, %v302_v33  ;;  %1676 = vmatprep.subr.mxu1 %v502_v34 }
  0x45   : > { %1731 = vmatpush3.msra.mxu0 %v503_v32  ;;  %1677 = vmatpush3.msra.mxu1 %v502_v34 }
  0x46   : > { %1732 = vmatprep.subr.mxu0 %v502_v34  ;;  %1678 = vmatprep.subr.mxu1 %v501_v35 }
  0x47   : > { %1733 = vmatpush3.msra.mxu0 %v502_v34  ;;  %1679 = vmatpush3.msra.mxu1 %v501_v35 }
  0x48   : > { %1734 = vmatprep.subr.mxu0 %v501_v35  ;;  %1760 = vmatprep.subr.mxu1 %v2295_v36 }
  0x49   : > { %1735 = vmatpush3.msra.mxu0 %v501_v35 }
  0x4a   : > { %1816 = vmatprep.subr.mxu0 %v2295_v36 }
  0xe8   : > { %v2299_v37 = vpop.f32.mrf.mxu0 }
  0xe9   : > { %v663_v41 = vmul.f32 %v2299_v37, %v2299_v37 }
  0xea   : > { %v2301_v38 = vpop.f32.mrf.mxu0 }
  0xeb   : > { %v662_v39 = vmul.f32 %v2301_v38, %v2301_v38  ;;  %1680 = vmatprep.mubr.f32.mxu1 %v2301_v38 }
  0xec   : > { %v2313_v42 = vpop.f32.mrf.mxu0  ;;  %1681 = vmatmul.mubr.f32.vlgmr.msra.gmra.mxu1 %v2299_v37 }
  0xed   : > { %1736 = vmatprep.mubr.f32.mxu0 %v662_v39  ;;  %1761 = vmatpush3.msra.mxu1 %v2295_v36  ;;  %v665_v47 = vmul.f32 %v2313_v42, %v2313_v42 }
  0xee   : > { %v2322_v44 = vpop.f32.mrf.mxu0  ;;  %1737 = vmatmul.mubr.f32.vlgmr.msra.gmra.mxu0 %v663_v41  ;;  %1762 = vmatprep.subr.mxu1 %v2309_v40 }
  0xef   : > { %v664_v45 = vmul.f32 %v2322_v44, %v2322_v44  ;;  %1683 = vmatprep.mubr.f32.mxu1 %v2322_v44  ;;  %1763 = vmatpush3.msra.mxu1 %v2309_v40 }
  0xf0   : > { %v2336_v48 = vpop.f32.mrf.mxu0  ;;  %1684 = vmatmul.mubr.f32.gmra.mxu1 %v2313_v42  ;;  %1764 = vmatprep.subr.mxu1 %v2320_v43 }
  0xf1   : > { %1739 = vmatprep.mubr.f32.mxu0 %v664_v45  ;;  %1765 = vmatpush3.msra.mxu1 %v2320_v43  ;;  %v667_v53 = vmul.f32 %v2336_v48, %v2336_v48 }
  0xf2   : > { %v2346_v50 = vpop.f32.mrf.mxu0  ;;  %1740 = vmatmul.mubr.f32.gmra.mxu0 %v665_v47  ;;  %1766 = vmatprep.subr.mxu1 %v2332_v46 }
  0xf3   : > { %v666_v51 = vmul.f32 %v2346_v50, %v2346_v50  ;;  %1686 = vmatprep.mubr.f32.mxu1 %v2346_v50  ;;  %1767 = vmatpush3.msra.mxu1 %v2332_v46 }
  0xf4   : > { %v2360_v54 = vpop.f32.mrf.mxu0  ;;  %1687 = vmatmul.mubr.f32.gmra.mxu1 %v2336_v48  ;;  %1768 = vmatprep.subr.mxu1 %v2344_v49 }
  0xf5   : > { %1742 = vmatprep.mubr.f32.mxu0 %v666_v51  ;;  %1769 = vmatpush3.msra.mxu1 %v2344_v49  ;;  %v669_v59 = vmul.f32 %v2360_v54, %v2360_v54 }
  0xf6   : > { %v2370_v56 = vpop.f32.mrf.mxu0  ;;  %1743 = vmatmul.mubr.f32.gmra.mxu0 %v667_v53  ;;  %1770 = vmatprep.subr.mxu1 %v2356_v52 }
  0xf7   : > { %v668_v57 = vmul.f32 %v2370_v56, %v2370_v56  ;;  %1689 = vmatprep.mubr.f32.mxu1 %v2370_v56  ;;  %1771 = vmatpush3.msra.mxu1 %v2356_v52 }
  0xf8   : > { %v2384_v60 = vpop.f32.mrf.mxu0  ;;  %1690 = vmatmul.mubr.f32.gmra.mxu1 %v2360_v54  ;;  %1772 = vmatprep.subr.mxu1 %v2368_v55 }
  0xf9   : > { %1745 = vmatprep.mubr.f32.mxu0 %v668_v57  ;;  %1773 = vmatpush3.msra.mxu1 %v2368_v55  ;;  %v671_v1 = vmul.f32 %v2384_v60, %v2384_v60 }
  0xfa   : > { %v2394_v62 = vpop.f32.mrf.mxu0  ;;  %1746 = vmatmul.mubr.f32.gmra.mxu0 %v669_v59  ;;  %1774 = vmatprep.subr.mxu1 %v2380_v58 }
  0xfb   : > { %v670_v63 = vmul.f32 %v2394_v62, %v2394_v62  ;;  %1692 = vmatprep.mubr.f32.mxu1 %v2394_v62  ;;  %1775 = vmatpush3.msra.mxu1 %v2380_v58 }
  0xfc   : > { %v2408_v2 = vpop.f32.mrf.mxu0  ;;  %1693 = vmatmul.mubr.f32.gmra.mxu1 %v2384_v60  ;;  %1776 = vmatprep.subr.mxu1 %v2392_v61 }
  0xfd   : > { %1748 = vmatprep.mubr.f32.mxu0 %v670_v63  ;;  %1777 = vmatpush3.msra.mxu1 %v2392_v61  ;;  %v673_v7 = vmul.f32 %v2408_v2, %v2408_v2 }
  0xfe   : > { %v2418_v4 = vpop.f32.mrf.mxu0  ;;  %1749 = vmatmul.mubr.f32.gmra.mxu0 %v671_v1  ;;  %1778 = vmatprep.subr.mxu1 %v2404_v0 }
  0xff   : > { %v672_v5 = vmul.f32 %v2418_v4, %v2418_v4  ;;  %1695 = vmatprep.mubr.f32.mxu1 %v2418_v4  ;;  %1779 = vmatpush3.msra.mxu1 %v2404_v0 }
 0x100   : > { %v2432_v8 = vpop.f32.mrf.mxu0  ;;  %1696 = vmatmul.mubr.f32.gmra.mxu1 %v2408_v2  ;;  %1780 = vmatprep.subr.mxu1 %v2416_v3 }
 0x101   : > { %1751 = vmatprep.mubr.f32.mxu0 %v672_v5  ;;  %1781 = vmatpush3.msra.mxu1 %v2416_v3  ;;  %v675_v12 = vmul.f32 %v2432_v8, %v2432_v8 }
 0x102   : > { %v2437_v9 = vpop.f32.mrf.mxu0  ;;  %1752 = vmatmul.mubr.f32.gmra.mxu0 %v673_v7  ;;  %1782 = vmatprep.subr.mxu1 %v2428_v6 }
 0x103   : > { %v674_v11 = vmul.f32 %v2437_v9, %v2437_v9  ;;  %1698 = vmatprep.mubr.f32.mxu1 %v2437_v9  ;;  %1783 = vmatpush3.msra.mxu1 %v2428_v6 }
 0x104   : > { %v2451_v13 = vpop.f32.mrf.mxu0  ;;  %1699 = vmatmul.mubr.f32.gmra.mxu1 %v2432_v8  ;;  %1817 = vmatpush3.msra.mxu0 %v2295_v36 }
 0x105   : > { %1754 = vmatprep.mubr.f32.mxu0 %v674_v11  ;;  %1784 = vmatprep.subr.mxu1 %v2443_v10  ;;  %v677_v17 = vmul.f32 %v2451_v13, %v2451_v13 }
 0x106   : > { %v2456_v14 = vpop.f32.mrf.mxu0  ;;  %1755 = vmatmul.mubr.f32.gmra.mxu0 %v675_v12  ;;  %1818 = vmatprep.subr.mxu0 %v2309_v40 }
 0x107   : > { %v676_v16 = vmul.f32 %v2456_v14, %v2456_v14  ;;  %1701 = vmatprep.mubr.f32.mxu1 %v2456_v14  ;;  %1785 = vmatpush3.msra.mxu1 %v2443_v10 }
 0x108   : > { %1702 = vmatmul.mubr.f32.gmra.mxu1 %v2451_v13  ;;  %1819 = vmatpush3.msra.mxu0 %v2309_v40 }
 0x109   : > { %1757 = vmatprep.mubr.f32.mxu0 %v676_v16  ;;  %1786 = vmatprep.subr.mxu1 %v2462_v15 }
 0x10a   : > { %1758 = vmatmul.mubr.f32.gmra.mxu0 %v677_v17  ;;  %1820 = vmatprep.subr.mxu0 %v2320_v43 }
 0x10b   : > { %1787 = vmatpush3.msra.mxu1 %v2462_v15  ;;  %1821 = vmatpush3.msra.mxu0 %v2320_v43 }
 0x10c   : > { %1822 = vmatprep.subr.mxu0 %v2332_v46  ;;  %1788 = vmatprep.subr.mxu1 %v2501_v18 }
 0x10d   : > { %1823 = vmatpush3.msra.mxu0 %v2332_v46  ;;  %1789 = vmatpush3.msra.mxu1 %v2501_v18 }
 0x10e   : > { %1824 = vmatprep.subr.mxu0 %v2344_v49  ;;  %1790 = vmatprep.subr.mxu1 %v2509_v19 }
 0x10f   : > { %1825 = vmatpush3.msra.mxu0 %v2344_v49  ;;  %1791 = vmatpush3.msra.mxu1 %v2509_v19 }
 0x110   : > { %1826 = vmatprep.subr.mxu0 %v2356_v52  ;;  %1872 = vmatprep.subr.mxu1 %v2295_v36 }
 0x111   : > { %1827 = vmatpush3.msra.mxu0 %v2356_v52 }
 0x112   : > { %1828 = vmatprep.subr.mxu0 %v2368_v55 }
 0x113   : > { %1829 = vmatpush3.msra.mxu0 %v2368_v55 }
 0x114   : > { %1830 = vmatprep.subr.mxu0 %v2380_v58 }
 0x115   : > { %1831 = vmatpush3.msra.mxu0 %v2380_v58 }
 0x116   : > { %1832 = vmatprep.subr.mxu0 %v2392_v61 }
 0x117   : > { %1833 = vmatpush3.msra.mxu0 %v2392_v61 }
 0x118   : > { %1834 = vmatprep.subr.mxu0 %v2404_v0 }
 0x119   : > { %1835 = vmatpush3.msra.mxu0 %v2404_v0 }
 0x11a   : > { %1836 = vmatprep.subr.mxu0 %v2416_v3 }
 0x11b   : > { %1837 = vmatpush3.msra.mxu0 %v2416_v3 }
 0x11c   : > { %1838 = vmatprep.subr.mxu0 %v2428_v6 }
 0x11d   : > { %1839 = vmatpush3.msra.mxu0 %v2428_v6 }
 0x11e   : > { %1840 = vmatprep.subr.mxu0 %v2443_v10 }
 0x11f   : > { %1841 = vmatpush3.msra.mxu0 %v2443_v10 }
 0x120   : > { %1842 = vmatprep.subr.mxu0 %v2462_v15 }
 0x121   : > { %1843 = vmatpush3.msra.mxu0 %v2462_v15 }
 0x122   : > { %1844 = vmatprep.subr.mxu0 %v2501_v18 }
 0x123   : > { %1845 = vmatpush3.msra.mxu0 %v2501_v18 }
 0x124   : > { %1846 = vmatprep.subr.mxu0 %v2509_v19 }
 0x125   : > { %1847 = vmatpush3.msra.mxu0 %v2509_v19 }
 0x1ac   : > { %v1682_v20 = vpop.f32.mrf.mxu1 }
 0x1ad   : > { %v824_v21 = vmul.f32 %v1682_v20, %v1682_v20 }
 0x1ae   : > { %v583_v22 = vpop.f32.mrf.mxu1  ;;  %v1738_v23 = vpop.f32.mrf.mxu0 }
 0x1af   : > { %v823_v24 = vmul.f32 %v583_v22, %v583_v22  ;;  %v840_v25 = vsub.f32 %v1738_v23, %v824_v21  ;;  %1792 = vmatprep.mubr.f32.mxu1 %v583_v22 }
 0x1b0   : > { %v1685_v26 = vpop.f32.mrf.mxu1  ;;  %v744_v27 = vpop.f32.mrf.mxu0  ;;  %1793 = vmatmul.mubr.f32.vlgmr.msra.gmra.mxu1 %v1682_v20 }
 0x1b1   : > { %v856_v28 = vmax.f32 %v840_v25, 0.0  ;;  %v826_v29 = vmul.f32 %v1685_v26, %v1685_v26  ;;  %v839_v30 = vsub.f32 %v744_v27, %v823_v24  ;;  %1888 = vmatpush3.msra.mxu1 %v2295_v36 }
 0x1b2   : > { %v593_v31 = vpop.f32.mrf.mxu1  ;;  %v1741_v32 = vpop.f32.mrf.mxu0  ;;  %1873 = vmatprep.subr.mxu1 %v2309_v40 }
 0x1b3   : > { %v855_v33 = vmax.f32 %v839_v30, 0.0  ;;  %v825_v34 = vmul.f32 %v593_v31, %v593_v31  ;;  %v842_v35 = vsub.f32 %v1741_v32, %v826_v29  ;;  %1795 = vmatprep.mubr.f32.mxu1 %v593_v31  ;;  %1889 = vmatpush3.msra.mxu1 %v2309_v40  ;;  %v872_v39 = vadd.f32 1e-05, %v856_v28 }
 0x1b4   : > { %v1688_v41 = vpop.f32.mrf.mxu1  ;;  %v754_v45 = vpop.f32.mrf.mxu0  ;;  %1796 = vmatmul.mubr.f32.gmra.mxu1 %v1685_v26  ;;  %1874 = vmatprep.subr.mxu1 %v2320_v43 }
 0x1b5   : > { %v871_v47 = vadd.f32 1e-05, %v855_v33  ;;  %v858_v51 = vmax.f32 %v842_v35, 0.0  ;;  %v828_v53 = vmul.f32 %v1688_v41, %v1688_v41  ;;  %1890 = vmatpush3.msra.mxu1 %v2320_v43  ;;  %v841_v36 = vsub.f32 %v754_v45, %v825_v34 }
 0x1b6   : > { %v603_v57 = vpop.f32.mrf.mxu1  ;;  %v1744_v59 = vpop.f32.mrf.mxu0  ;;  %1875 = vmatprep.subr.mxu1 %v2332_v46 }
 0x1b7   : > { %1988 = vrsqrt.f32 %v871_v47  ;;  %v874_v63 = vadd.f32 1e-05, %v858_v51  ;;  %v827_v1 = vmul.f32 %v603_v57, %v603_v57  ;;  %v844_v40 = vsub.f32 %v1744_v59, %v828_v53  ;;  %1798 = vmatprep.mubr.f32.mxu1 %v603_v57  ;;  %1891 = vmatpush3.msra.mxu1 %v2332_v46 }
 0x1b8   : > { %1990 = vrsqrt.f32 %v872_v39  ;;  %v857_v5 = vmax.f32 %v841_v36, 0.0  ;;  %v1691_v7 = vpop.f32.mrf.mxu1  ;;  %v764_v11 = vpop.f32.mrf.mxu0  ;;  %1799 = vmatmul.mubr.f32.gmra.mxu1 %v1688_v41  ;;  %1876 = vmatprep.subr.mxu1 %v2344_v49 }
 0x1b9   : > { %v860_v43 = vmax.f32 %v844_v40, 0.0  ;;  %v830_v12 = vmul.f32 %v1691_v7, %v1691_v7  ;;  %v843_v16 = vsub.f32 %v764_v11, %v827_v1  ;;  %1892 = vmatpush3.msra.mxu1 %v2344_v49  ;;  %1992 = vrsqrt.f32 %v874_v63 }
 0x1ba   : > { %v873_v17 = vadd.f32 1e-05, %v857_v5  ;;  %v613_v20 = vpop.f32.mrf.mxu1  ;;  %v1747_v21 = vpop.f32.mrf.mxu0  ;;  %1877 = vmatprep.subr.mxu1 %v2356_v52 }
 0x1bb   : > { %v859_v22 = vmax.f32 %v843_v16, 0.0  ;;  %v829_v46 = vmul.f32 %v613_v20, %v613_v20  ;;  %v846_v23 = vsub.f32 %v1747_v21, %v830_v12  ;;  %1801 = vmatprep.mubr.f32.mxu1 %v613_v20  ;;  %1893 = vmatpush3.msra.mxu1 %v2356_v52  ;;  %v876_v26 = vadd.f32 1e-05, %v860_v43 }
 0x1bc   : > { %1994 = vrsqrt.f32 %v873_v17  ;;  %v1694_v24 = vpop.f32.mrf.mxu1  ;;  %v774_v25 = vpop.f32.mrf.mxu0  ;;  %1802 = vmatmul.mubr.f32.gmra.mxu1 %v1691_v7  ;;  %1878 = vmatprep.subr.mxu1 %v2368_v55 }
 0x1bd   : > { %v875_v49 = vadd.f32 1e-05, %v859_v22  ;;  %v862_v27 = vmax.f32 %v846_v23, 0.0  ;;  %v832_v28 = vmul.f32 %v1694_v24, %v1694_v24  ;;  %1894 = vmatpush3.msra.mxu1 %v2368_v55  ;;  %v845_v29 = vsub.f32 %v774_v25, %v829_v46 }
 0x1be   : > { %v623_v30 = vpop.f32.mrf.mxu1  ;;  %v1750_v31 = vpop.f32.mrf.mxu0  ;;  %1879 = vmatprep.subr.mxu1 %v2380_v58 }
 0x1bf   : > { %1996 = vrsqrt.f32 %v875_v49  ;;  %v878_v32 = vadd.f32 1e-05, %v862_v27  ;;  %v831_v52 = vmul.f32 %v623_v30, %v623_v30  ;;  %v848_v33 = vsub.f32 %v1750_v31, %v832_v28  ;;  %1804 = vmatprep.mubr.f32.mxu1 %v623_v30  ;;  %1895 = vmatpush3.msra.mxu1 %v2380_v58 }
 0x1c0   : > { %v861_v34 = vmax.f32 %v845_v29, 0.0  ;;  %v1697_v35 = vpop.f32.mrf.mxu1  ;;  %v784_v39 = vpop.f32.mrf.mxu0  ;;  %1805 = vmatmul.mubr.f32.gmra.mxu1 %v1694_v24  ;;  %1880 = vmatprep.subr.mxu1 %v2392_v61  ;;  %1998 = vrsqrt.f32 %v876_v26 }
 0x1c1   : > { %v864_v55 = vmax.f32 %v848_v33, 0.0  ;;  %v834_v41 = vmul.f32 %v1697_v35, %v1697_v35  ;;  %v847_v45 = vsub.f32 %v784_v39, %v831_v52  ;;  %1896 = vmatpush3.msra.mxu1 %v2392_v61  ;;  %2000 = vrsqrt.f32 %v878_v32 }
 0x1c2   : > { %v877_v47 = vadd.f32 1e-05, %v861_v34  ;;  %v633_v51 = vpop.f32.mrf.mxu1  ;;  %v1753_v53 = vpop.f32.mrf.mxu0  ;;  %1881 = vmatprep.subr.mxu1 %v2404_v0 }
 0x1c3   : > { %v863_v36 = vmax.f32 %v847_v45, 0.0  ;;  %v833_v58 = vmul.f32 %v633_v51, %v633_v51  ;;  %v850_v57 = vsub.f32 %v1753_v53, %v834_v41  ;;  %1807 = vmatprep.mubr.f32.mxu1 %v633_v51  ;;  %1897 = vmatpush3.msra.mxu1 %v2404_v0  ;;  %v880_v40 = vadd.f32 1e-05, %v864_v55 }
 0x1c4   : > { %v1989_v59 = vpop.eup %1988  ;;  %2002 = vrsqrt.f32 %v877_v47  ;;  %v1700_v63 = vpop.f32.mrf.mxu1  ;;  %1808 = vmatmul.mubr.f32.gmra.mxu1 %v1697_v35  ;;  %1882 = vmatprep.subr.mxu1 %v2416_v3 }
 0x1c5   : > { %v794_v1 = vpop.f32.mrf.mxu0  ;;  %v1991_v61 = vpop.eup %1990  ;;  %v879_v5 = vadd.f32 1e-05, %v863_v36  ;;  %v866_v7 = vmax.f32 %v850_v57, 0.0  ;;  %v836_v11 = vmul.f32 %v1700_v63, %v1700_v63  ;;  %1848 = vmatprep.mubr.f32.mxu0 %v1989_v59  ;;  %1898 = vmatpush3.msra.mxu1 %v2416_v3 }
 0x1c6   : > { %v849_v43 = vsub.f32 %v794_v1, %v833_v58  ;;  %v643_v12 = vpop.f32.mrf.mxu1  ;;  %1849 = vmatmul.mubr.f32.vlgmr.msra.gmra.mxu0 %v1991_v61  ;;  %1883 = vmatprep.subr.mxu1 %v2428_v6  ;;  %v1993_v21 = vpop.eup %1992 }
 0x1c7   : > { %v1756_v16 = vpop.f32.mrf.mxu0  ;;  %2004 = vrsqrt.f32 %v879_v5  ;;  %v882_v0 = vadd.f32 1e-05, %v866_v7  ;;  %v835_v17 = vmul.f32 %v643_v12, %v643_v12  ;;  %1810 = vmatprep.mubr.f32.mxu1 %v643_v12  ;;  %1899 = vmatpush3.msra.mxu1 %v2428_v6 }
 0x1c8   : > { %v852_v20 = vsub.f32 %v1756_v16, %v836_v11  ;;  %v865_v22 = vmax.f32 %v849_v43, 0.0  ;;  %v1703_v46 = vpop.f32.mrf.mxu1  ;;  %1811 = vmatmul.mubr.f32.gmra.mxu1 %v1700_v63  ;;  %1884 = vmatprep.subr.mxu1 %v2443_v10  ;;  %2006 = vrsqrt.f32 %v880_v40 }
 0x1c9   : > { %v804_v23 = vpop.f32.mrf.mxu0  ;;  %v1995_v3 = vpop.eup %1994  ;;  %v838_v25 = vmul.f32 %v1703_v46, %v1703_v46  ;;  %1900 = vmatpush3.msra.mxu1 %v2443_v10  ;;  %2008 = vrsqrt.f32 %v882_v0  ;;  %v2553_v0 = vld [vmem:[%s2681_s4] ss:$0 sm:$0xff] }
 0x1ca   : > { %v868_v24 = vmax.f32 %v852_v20, 0.0  ;;  %v851_v26 = vsub.f32 %v804_v23, %v835_v17  ;;  %v881_v49 = vadd.f32 1e-05, %v865_v22  ;;  %1851 = vmatprep.mubr.f32.mxu0 %v1995_v3  ;;  %v653_v27 = vpop.f32.mrf.mxu1  ;;  %1885 = vmatprep.subr.mxu1 %v2462_v15  ;;  %v2561_v22 = vld [vmem:[%s2682_s5] ss:$0 sm:$0xff] }
 0x1cb   : > { %v1759_v28 = vpop.f32.mrf.mxu0  ;;  %v837_v29 = vmul.f32 %v653_v27, %v653_v27  ;;  %1852 = vmatmul.mubr.f32.gmra.mxu0 %v1993_v21  ;;  %1813 = vmatprep.mubr.f32.mxu1 %v653_v27 }
 0x1cc   : > { %v867_v6 = vmax.f32 %v851_v26, 0.0  ;;  %v854_v30 = vsub.f32 %v1759_v28, %v838_v25  ;;  %v1997_v31 = vpop.eup %1996  ;;  %2010 = vrsqrt.f32 %v881_v49  ;;  %1814 = vmatmul.mubr.f32.gmra.mxu1 %v1703_v46  ;;  %v884_v52 = vadd.f32 1e-05, %v868_v24 }
 0x1cd   : > { %v814_v32 = vpop.f32.mrf.mxu0  ;;  %1854 = vmatprep.mubr.f32.mxu0 %v1997_v31  ;;  %1901 = vmatpush3.msra.mxu1 %v2462_v15  ;;  %v1999_v35 = vpop.eup %1998 }
 0x1ce   : > { %v883_v33 = vadd.f32 1e-05, %v867_v6  ;;  %v870_v34 = vmax.f32 %v854_v30, 0.0  ;;  %v853_v10 = vsub.f32 %v814_v32, %v837_v29  ;;  %1886 = vmatprep.subr.mxu1 %v2501_v18  ;;  %v2001_v55 = vpop.eup %2000 }
 0x1cf   : > { %1855 = vmatmul.mubr.f32.gmra.mxu0 %v1999_v35  ;;  %1902 = vmatpush3.msra.mxu1 %v2501_v18 }
 0x1d0   : > { %2012 = vrsqrt.f32 %v883_v33  ;;  %v869_v39 = vmax.f32 %v853_v10, 0.0  ;;  %v886_v41 = vadd.f32 1e-05, %v870_v34  ;;  %1887 = vmatprep.subr.mxu1 %v2509_v19 }
 0x1d1   : > { %v2003_v45 = vpop.eup %2002  ;;  %2014 = vrsqrt.f32 %v884_v52  ;;  %1903 = vmatpush3.msra.mxu1 %v2509_v19 }
 0x1d2   : > { %v885_v47 = vadd.f32 1e-05, %v869_v39  ;;  %1857 = vmatprep.mubr.f32.mxu0 %v2003_v45 }
 0x1d3   : > { %1858 = vmatmul.mubr.f32.gmra.mxu0 %v2001_v55 }
 0x1d4   : > { %2016 = vrsqrt.f32 %v885_v47  ;;  %v2005_v15 = vpop.eup %2004 }
 0x1d5   : > { %2018 = vrsqrt.f32 %v886_v41  ;;  %1860 = vmatprep.mubr.f32.mxu0 %v2005_v15  ;;  %v2007_v51 = vpop.eup %2006 }
 0x1d6   : > { %v2009_v53 = vpop.eup %2008 }
 0x1d7   : > { %1861 = vmatmul.mubr.f32.gmra.mxu0 %v2007_v51 }
 0x1d9   : > { %v2011_v18 = vpop.eup %2010 }
 0x1da   : > { %1863 = vmatprep.mubr.f32.mxu0 %v2011_v18 }
 0x1db   : > { %1864 = vmatmul.mubr.f32.gmra.mxu0 %v2009_v53 }
 0x1dd   : > { %v2013_v36 = vpop.eup %2012 }
 0x1de   : > { %1866 = vmatprep.mubr.f32.mxu0 %v2013_v36  ;;  %v2015_v58 = vpop.eup %2014 }
 0x1df   : > { %1867 = vmatmul.mubr.f32.gmra.mxu0 %v2015_v58 }
 0x1e1   : > { %v2017_v57 = vpop.eup %2016 }
 0x1e2   : > { %v2019_v59 = vpop.eup %2018  ;;  %1869 = vmatprep.mubr.f32.mxu1 %v2017_v57 }
 0x1e3   : > { %1870 = vmatmul.mubr.f32.vlgmr.msra.gmra.mxu1 %v2019_v59 }
 0x270   : > { %v1794_v19 = vpop.f32.mrf.mxu1 }
 0x271   : > { %v1210_v12 = vsub.f32 %v2299_v37, %v1794_v19 }
 0x272   : > { %v985_v63 = vpop.f32.mrf.mxu1 }
 0x273   : > { %v1209_v17 = vsub.f32 %v2301_v38, %v985_v63 }
 0x274   : > { %v1797_v1 = vpop.f32.mrf.mxu1 }
 0x275   : > { %v1212_v3 = vsub.f32 %v2313_v42, %v1797_v1 }
 0x276   : > { %v995_v61 = vpop.f32.mrf.mxu1 }
 0x277   : > { %v1211_v26 = vsub.f32 %v2322_v44, %v995_v61 }
 0x278   : > { %v1800_v40 = vpop.f32.mrf.mxu1 }
 0x279   : > { %v1214_v42 = vsub.f32 %v2336_v48, %v1800_v40 }
 0x27a   : > { %v1005_v5 = vpop.f32.mrf.mxu1 }
 0x27b   : > { %v1213_v44 = vsub.f32 %v2346_v50, %v1005_v5 }
 0x27c   : > { %v1803_v7 = vpop.f32.mrf.mxu1 }
 0x27d   : > { %v1216_v35 = vsub.f32 %v2360_v54, %v1803_v7 }
 0x27e   : > { %v1015_v11 = vpop.f32.mrf.mxu1 }
 0x27f   : > { %v1215_v50 = vsub.f32 %v2370_v56, %v1015_v11 }
 0x280   : > { %v1806_v43 = vpop.f32.mrf.mxu1 }
 0x281   : > { %v1218_v54 = vsub.f32 %v2384_v60, %v1806_v43 }
 0x282   : > { %v1025_v21 = vpop.f32.mrf.mxu1 }
 0x283   : > { %v1217_v56 = vsub.f32 %v2394_v62, %v1025_v21 }
 0x284   : > { %v1809_v49 = vpop.f32.mrf.mxu1 }
 0x285   : > { %v1220_v60 = vsub.f32 %v2408_v2, %v1809_v49 }
 0x286   : > { %v1850_v16 = vpop.f32.mrf.mxu0  ;;  %v1035_v32 = vpop.f32.mrf.mxu1 }
 0x287   : > { %v1226_v20 = vmul.f32 %v1850_v16, %v1210_v12  ;;  %v1219_v62 = vsub.f32 %v2418_v4, %v1035_v32 }
 0x288   : > { %v1130_v46 = vpop.f32.mrf.mxu0  ;;  %v1812_v45 = vpop.f32.mrf.mxu1 }
 0x289   : > { %v1249_v37 = vmul.f32 %v2553_v0, %v1226_v20  ;;  %v1225_v23 = vmul.f32 %v1209_v17, %v1130_v46  ;;  %v1222_v2 = vsub.f32 %v2432_v8, %v1812_v45 }
 0x28a   : > { %v1045_v59 = vpop.f32.mrf.mxu1 }
 0x28b   : > { %v1272_v24 = vadd.f32 %v2561_v22, %v1249_v37  ;;  %v1248_v25 = vmul.f32 %v2553_v0, %v1225_v23  ;;  %v1853_v38 = vpop.f32.mrf.mxu0  ;;  %v1221_v4 = vsub.f32 %v2437_v9, %v1045_v59 }
 0x28c   : > { %v1228_v27 = vmul.f32 %v1853_v38, %v1212_v3  ;;  %v1815_v43 = vpop.f32.mrf.mxu1 }
 0x28d   : > { %1288 = vst [vmem:[%s2568_s16 + $0x8] sm:$0xff] %v1272_v24  ;;  %v1271_v28 = vadd.f32 %v2561_v22, %v1248_v25  ;;  %v1140_v6 = vpop.f32.mrf.mxu0  ;;  %v1224_v8 = vsub.f32 %v2451_v13, %v1815_v43 }
 0x28e   : > { %v1251_v29 = vmul.f32 %v2553_v0, %v1228_v27  ;;  %v1227_v30 = vmul.f32 %v1211_v26, %v1140_v6  ;;  %v1055_v3 = vpop.f32.mrf.mxu1 }
 0x28f   : > { %1287 = vst [vmem:[%s2568_s16] sm:$0xff] %v1271_v28  ;;  %v1856_v31 = vpop.f32.mrf.mxu0  ;;  %v1223_v6 = vsub.f32 %v2456_v14, %v1055_v3 }
 0x290   : > { %v1274_v52 = vadd.f32 %v2561_v22, %v1251_v29  ;;  %v1250_v33 = vmul.f32 %v2553_v0, %v1227_v30  ;;  %v1230_v34 = vmul.f32 %v1856_v31, %v1214_v42 }
 0x291   : > { %v1150_v10 = vpop.f32.mrf.mxu0 }
 0x292   : > { %1290 = vst [vmem:[%s2568_s16 + $0x18] sm:$0xff] %v1274_v52  ;;  %v1273_v48 = vadd.f32 %v2561_v22, %v1250_v33  ;;  %v1253_v39 = vmul.f32 %v2553_v0, %v1230_v34  ;;  %v1229_v55 = vmul.f32 %v1213_v44, %v1150_v10 }
 0x293   : > { %v1859_v41 = vpop.f32.mrf.mxu0 }
 0x294   : > { %1289 = vst [vmem:[%s2568_s16 + $0x10] sm:$0xff] %v1273_v48  ;;  %v1276_v47 = vadd.f32 %v2561_v22, %v1253_v39  ;;  %v1252_v15 = vmul.f32 %v2553_v0, %v1229_v55  ;;  %v1232_v51 = vmul.f32 %v1859_v41, %v1216_v35 }
 0x295   : > { %v1160_v53 = vpop.f32.mrf.mxu0 }
 0x296   : > { %1292 = vst [vmem:[%s2568_s16 + $0x28] sm:$0xff] %v1276_v47  ;;  %v1275_v18 = vadd.f32 %v2561_v22, %v1252_v15  ;;  %v1255_v36 = vmul.f32 %v2553_v0, %v1232_v51  ;;  %v1231_v58 = vmul.f32 %v1215_v50, %v1160_v53 }
 0x297   : > { %v1862_v57 = vpop.f32.mrf.mxu0 }
 0x298   : > { %1291 = vst [vmem:[%s2568_s16 + $0x20] sm:$0xff] %v1275_v18  ;;  %v1278_v19 = vadd.f32 %v2561_v22, %v1255_v36  ;;  %v1254_v63 = vmul.f32 %v2553_v0, %v1231_v58  ;;  %v1234_v1 = vmul.f32 %v1862_v57, %v1218_v54 }
 0x299   : > { %v1170_v61 = vpop.f32.mrf.mxu0 }
 0x29a   : > { %1294 = vst [vmem:[%s2568_s16 + $0x38] sm:$0xff] %v1278_v19  ;;  %v1277_v40 = vadd.f32 %v2561_v22, %v1254_v63  ;;  %v1257_v5 = vmul.f32 %v2553_v0, %v1234_v1  ;;  %v1233_v7 = vmul.f32 %v1217_v56, %v1170_v61 }
 0x29b   : > { %v1865_v11 = vpop.f32.mrf.mxu0 }
 0x29c   : > { %1293 = vst [vmem:[%s2568_s16 + $0x30] sm:$0xff] %v1277_v40  ;;  %v1280_v12 = vadd.f32 %v2561_v22, %v1257_v5  ;;  %v1256_v16 = vmul.f32 %v2553_v0, %v1233_v7  ;;  %v1236_v17 = vmul.f32 %v1865_v11, %v1220_v60 }
 0x29d   : > { %v1180_v20 = vpop.f32.mrf.mxu0 }
 0x29e   : > { %1296 = vst [vmem:[%s2568_s16 + $0x48] sm:$0xff] %v1280_v12  ;;  %v1279_v21 = vadd.f32 %v2561_v22, %v1256_v16  ;;  %v1259_v46 = vmul.f32 %v2553_v0, %v1236_v17  ;;  %v1235_v37 = vmul.f32 %v1219_v62, %v1180_v20 }
 0x29f   : > { %v1868_v23 = vpop.f32.mrf.mxu0 }
 0x2a0   : > { %1295 = vst [vmem:[%s2568_s16 + $0x40] sm:$0xff] %v1279_v21  ;;  %v1282_v24 = vadd.f32 %v2561_v22, %v1259_v46  ;;  %v1258_v25 = vmul.f32 %v2553_v0, %v1235_v37  ;;  %v1238_v38 = vmul.f32 %v1868_v23, %v1222_v2 }
 0x2a1   : > { %v1190_v26 = vpop.f32.mrf.mxu0 }
 0x2a2   : > { %1298 = vst [vmem:[%s2568_s16 + $0x58] sm:$0xff] %v1282_v24  ;;  %v1281_v49 = vadd.f32 %v2561_v22, %v1258_v25  ;;  %v1261_v27 = vmul.f32 %v2553_v0, %v1238_v38  ;;  %v1237_v28 = vmul.f32 %v1221_v4, %v1190_v26 }
 0x2a3   : > { %v1871_v9 = vpop.f32.mrf.mxu1 }
 0x2a4   : > { %v1240_v42 = vmul.f32 %v1871_v9, %v1224_v8  ;;  %1297 = vst [vmem:[%s2568_s16 + $0x50] sm:$0xff] %v1281_v49  ;;  %v1284_v29 = vadd.f32 %v2561_v22, %v1261_v27  ;;  %v1260_v13 = vmul.f32 %v2553_v0, %v1237_v28 }
 0x2a5   : > { %v1200_v30 = vpop.f32.mrf.mxu1 }
 0x2a6   : > { %v1263_v31 = vmul.f32 %v2553_v0, %v1240_v42  ;;  %v1239_v44 = vmul.f32 %v1223_v6, %v1200_v30  ;;  %1300 = vst [vmem:[%s2568_s16 + $0x68] sm:$0xff] %v1284_v29  ;;  %v1283_v32 = vadd.f32 %v2561_v22, %v1260_v13 }
 0x2a8   : > { %v1286_v52 = vadd.f32 %v2561_v22, %v1263_v31  ;;  %v1262_v33 = vmul.f32 %v2553_v0, %v1239_v44  ;;  %1299 = vst [vmem:[%s2568_s16 + $0x60] sm:$0xff] %v1283_v32 }
 0x2aa   : > { %1302 = vst [vmem:[%s2568_s16 + $0x78] sm:$0xff] %v1286_v52  ;;  %v1285_v14 = vadd.f32 %v2561_v22, %v1262_v33 }
 0x2ac   : > { %1301 = vst [vmem:[%s2568_s16 + $0x70] sm:$0xff] %v1285_v14 }
 0x2ad   : > { %s1461_s14 = sshll.u32 %s2070_s24, 1  ;;  %s1467_s17 = sshll.u32 %s2074_s25, 6 }
 0x2ae   : > { %s1317_s18 = sadd.s32 %s1467_s17, %s1461_s14  ;;  %s1330_s19 = sshll.u32 %s2568_s16, 4  ;;  %s1331_s19 = int_to_ptr.vmem [resolvable:$true] %s1330_s19 }
 0x2af   : > { %s1463_s30 = sshll.u32 %s1317_s18, 7  ;;  %s2088_s9 = smov 256  }
 0x2b0   : > { %s1319_s20 = scalar_lea.hbm %s2683_s6, %s1463_s30  ;;  %1904 = sst [smem:[#allocation5]] (%p2181_p3), %s2088_s9 }
 0x2b1   : > { %s2089_s8 = smov 1024   ;;  %s2090_s0 = smov 2  }
 0x2b2   : > { %1905 = sst [smem:[#allocation5 + $0x1]] (%p2181_p3), %s2089_s8  ;;  %s2091_s24 = smov 128  }
 0x2b3   : > { %1906 = sst [smem:[#allocation5 + $0x2]] (%p2181_p3), %s2090_s0  ;;  %s2092_s25 = smov 8  }
 0x2b4   : > { %1907 = sst [smem:[#allocation5 + $0x3]] (%p2181_p3), %s2091_s24  ;;  %s2093_s16 = smov 131072  }
 0x2b5   : > { %1908 = sst [smem:[#allocation5 + $0x4]] (%p2181_p3), %s2091_s24  ;;  %s2094_s14 = smov 0  }
 0x2b6   : > { %1909 = sst [smem:[#allocation5 + $0x5]] (%p2181_p3), %s2092_s25 }
 0x2b7   : > { %1910 = dma.general (%p2181_p3), %s1331_s19, 2048, %s1319_s20, %s1304_s12, %s2093_s16, [#allocation5], %s2094_s14, 0  }
 0x2b8 PF: > { %p1916_p0 = scmp.ge.s32.totalorder %s2086_s28, 2  ;;  %s1358_s17 = sand.u32 1, %s2058_s21  }
 0x2b9   : > { %s1359_s0 = scalar_lea.sflag [#allocation3], %s1358_s17 }
 0x2ba   : > { %p1913_p1 = pnand %p1916_p0, %p2190_p8 }
 0x2bc   : > { %p1914_p2 = pneg %p1913_p1 }
 0x2be   : > { %2053 = dma.done.wait (%p1914_p2), %s1359_s0, 2048  }
 0x2bf   : > { %2055 = vsyncadd (%p1914_p2), %s1359_s0, 4294965248  ;;  %s19_s28 = sadd.s32 1, %s2086_s28   ;;  %s2690_s10 = sld [smem:[#allocation7_spill]] }
 0x2c0   : > { %p16_p4 = scmp.ge.s32.totalorder %s19_s28, 18   ;;  %s2691_s21 = smov %s2062_s22 }
 0x2c1   : > { %s2692_s22 = smov %s2066_s23  ;;  %s2693_s23 = smov %s2199_s15 }
 0x2c2   : > { %s2694_s24 = smov %s2078_s26  ;;  %s2695_s25 = smov %s2082_s27 }
 0x2c3   : > { %s2696_s26 = smov %s2699_s7  ;;  %18 = sbr.rel (!%p16_p4) target bundleno = 7 (0x7), region = 87 }
 0x2c5   : > { %s2697_s27 = smov %s2690_s10 }
 0x2c8   :  { %1364 = vsyncpa [#allocation3], 1 }
 0x2c9   :  { %1366 = vsyncpa [#allocation3 + $0x1], 1 }

</bundles_post_ra>
